<compile_context>
chip_gen: v7x
topology: tpu7x:2x2x1
jax: 0.10.0
libtpu: 0.0.40
codegen_flags: <defaults>
</compile_context>

<pallas_src>
import functools

import jax
import jax.numpy as jnp
from jax import lax
from jax.experimental import pallas as pl
from jax.experimental.pallas import tpu as pltpu


def csam_kernel(wband_ref, bias_ref, gamma_ref, mask_ref, x_ref, o_ref, *, C, H, W):
    # wband_ref: (9, C, C) VMEM  banded channel-mixing weight per spatial tap
    #                            (zero channel padding baked into the band)
    # bias_ref : (1,)  SMEM      conv bias
    # gamma_ref: (1,)  SMEM      gamma
    # mask_ref : (9, 1, HW) VMEM per-tap 0/1 spatial validity masks
    # x_ref    : (1, C, HW) VMEM one batch element, lane-dense flattened HW
    # o_ref    : (1, C, HW) VMEM
    HW = H * W
    f32 = jnp.float32

    x = x_ref[0]                        # (C, HW), kept in the input dtype
    bias = bias_ref[0]
    gamma = gamma_ref[0]

    # f32 conv accumulator, initialised with the broadcast bias.
    conv = jnp.full((C, HW), bias, f32)

    for kh in range(3):
        for kw in range(3):
            t = kh * 3 + kw
            s = (kh - 1) * W + (kw - 1)          # flattened spatial offset
            # Channel mixing for this spatial tap on the MXU (f32 accumulate);
            # the conv's zero channel padding is encoded in the banded weight.
            y = jnp.dot(wband_ref[t], x, preferred_element_type=f32)   # (C, HW)
            if s != 0:
                # y'[c, p] = y[c, (p + s) mod HW]; out-of-image contributions
                # (H/W zero pad and the wrap-around) are zeroed by the mask.
                y = jnp.roll(y, -s, axis=1) * mask_ref[t]
            conv = conv + y

    # sigmoid built from exp (EUP) + divide.
    # TODO(synk): use pl.reciprocal(1 + exp(-conv), approx=True) once its
    # interpret-mode support is confirmed in the target jax version.
    att = 1.0 / (1.0 + jnp.exp(-conv))
    # x*att_scaled + x == x * (gamma*sigmoid(conv) + 1)
    o_ref[0] = (x * (gamma * att + 1.0)).astype(o_ref.dtype)


def csam_forward(x, conv_w, conv_b, gamma):
    B, C, H, W = x.shape
    HW = H * W
    dtype = x.dtype

    x_flat = x.reshape(B, C, HW)                 # lane-dense spatial axis

    # Banded channel-mixing weights: wband[t][co, ci] = w[ci-co+1, kh, kw] for
    # |ci - co| <= 1; channels outside [0, C) simply drop out (zero padding).
    w = conv_w.reshape(3, 3, 3).astype(jnp.float32)
    bands = (jnp.eye(C, k=-1, dtype=jnp.float32),
             jnp.eye(C, k=0, dtype=jnp.float32),
             jnp.eye(C, k=1, dtype=jnp.float32))
    wband = jnp.stack([
        w[0, kh, kw] * bands[0] + w[1, kh, kw] * bands[1] + w[2, kh, kw] * bands[2]
        for kh in range(3) for kw in range(3)
    ]).astype(dtype)                             # (9, C, C), matmul-operand dtype

    # Per-tap spatial validity masks on the flattened H*W axis (0/1 floats),
    # built once here so the kernel never runs iota / div / mod.
    p = jnp.arange(HW)
    hh, ww = p // W, p % W
    mask = jnp.stack([
        (((hh + (kh - 1)) >= 0) & ((hh + (kh - 1)) < H) &
         ((ww + (kw - 1)) >= 0) & ((ww + (kw - 1)) < W)).astype(jnp.float32)
        for kh in range(3) for kw in range(3)
    ]).reshape(9, 1, HW)

    bias = conv_b.reshape(1).astype(jnp.float32)
    g = gamma.reshape(1).astype(jnp.float32)

    kernel = functools.partial(csam_kernel, C=C, H=H, W=W)
    out = pl.pallas_call(
        kernel,
        out_shape=jax.ShapeDtypeStruct((B, C, HW), dtype),
        grid_spec=pltpu.PrefetchScalarGridSpec(
            num_scalar_prefetch=0,
            grid=(B,),
            in_specs=[
                pl.BlockSpec((9, C, C), lambda i: (0, 0, 0)),        # banded weights
                pl.BlockSpec(memory_space=pltpu.MemorySpace.SMEM),   # bias
                pl.BlockSpec(memory_space=pltpu.MemorySpace.SMEM),   # gamma
                pl.BlockSpec((9, 1, HW), lambda i: (0, 0, 0)),       # tap masks
                pl.BlockSpec((1, C, HW), lambda i: (i, 0, 0)),       # x (per batch)
            ],
            out_specs=pl.BlockSpec((1, C, HW), lambda i: (i, 0, 0)),
        ),
        compiler_params=pltpu.CompilerParams(
            dimension_semantics=("parallel",)),
    )(wband, bias, g, mask, x_flat)
    # TODO(synk): for large C*H*W, tile the flattened spatial axis (whole rows,
    # >=128-lane blocks with a 1-row halo) and/or C into extra parallel grid
    # axes and set vmem_limit_bytes so the per-step block fits v7x's 64 MiB
    # VMEM and both of its TensorCores get work; also fold B into sublanes for
    # tiny shapes like this example, which are per-step-overhead dominated.
    return out.reshape(B, C, H, W)


def csam_reference(x, conv_w, conv_b, gamma):
    # Pure-JAX reference mirroring the PyTorch forward exactly.
    x5 = x[:, None]                                # (B, 1, C, H, W)
    out = lax.conv_general_dilated(
        x5, conv_w, window_strides=(1, 1, 1),
        padding=((1, 1), (1, 1), (1, 1)),
        dimension_numbers=("NCDHW", "OIDHW", "NCDHW"))
    out = out + conv_b.reshape(1, 1, 1, 1, 1)
    out = gamma.reshape(()) * jax.nn.sigmoid(out)
    out = out.reshape(x.shape)                     # view(B, -1, H, W)
    return x * out + x


if __name__ == "__main__":
    key = jax.random.PRNGKey(0)
    kx, kw, kb = jax.random.split(key, 3)
    B, C, H, W = 2, 4, 16, 16
    x = jax.random.normal(kx, (B, C, H, W), jnp.float32)

    # nn.Conv3d(1, 1, 3, 1, 1): weight (1,1,3,3,3), bias (1,).  gamma is a
    # scalar parameter (torch inits it to 0); use nonzero synthetic values so
    # the conv/attention path actually contributes.
    conv_w = jax.random.normal(kw, (1, 1, 3, 3, 3), jnp.float32) * 0.2
    conv_b = jax.random.normal(kb, (1,), jnp.float32) * 0.1
    gamma = jnp.array([0.7], jnp.float32)

    out = jax.block_until_ready(csam_forward(x, conv_w, conv_b, gamma))
    ref = csam_reference(x, conv_w, conv_b, gamma)
    assert out.shape == (B, C, H, W)
    # Tolerance leaves headroom for reduced-precision f32 MXU passes.
    assert jnp.allclose(out, ref, atol=1e-3, rtol=1e-3), "mismatch vs reference"
    print("KERNEL_OK")
</pallas_src>

<mosaic_0001>
module attributes {stable_mosaic.version = 11 : i64} {
  func.func @csam_kernel(%arg0: i32, %arg1: memref<9x4x4xf32, #tpu.memory_space<vmem>>, %arg2: memref<1xf32, #tpu.memory_space<smem>>, %arg3: memref<1xf32, #tpu.memory_space<smem>>, %arg4: memref<9x1x256xf32, #tpu.memory_space<vmem>>, %arg5: memref<1x4x256xf32, #tpu.memory_space<vmem>>, %arg6: memref<1x4x256xf32, #tpu.memory_space<vmem>>) attributes {dimension_semantics = [#tpu.dimension_semantics<parallel>], iteration_bounds = array<i64: 2>, scalar_prefetch = 0 : i64, scratch_operands = 0 : i64, tpu.core_type = #tpu.core_type<tc>, window_params = [{pipeline_mode = #tpu.pipeline_mode<synchronous>, transform_indices = @transform_0, window_bounds = array<i64: 9, 4, 4>}, {transform_indices = @transform_1, window_bounds = array<i64: 1>}, {transform_indices = @transform_2, window_bounds = array<i64: 1>}, {pipeline_mode = #tpu.pipeline_mode<synchronous>, transform_indices = @transform_3, window_bounds = array<i64: 9, 1, 256>}, {transform_indices = @transform_4, window_bounds = array<i64: 1, 4, 256>}, {transform_indices = @transform_5, window_bounds = array<i64: 1, 4, 256>}]} {
    %c0 = arith.constant 0 : index
    %c0_0 = arith.constant 0 : index
    %c0_1 = arith.constant 0 : index
    %0 = vector.load %arg5[%c0, %c0_0, %c0_1] : memref<1x4x256xf32, #tpu.memory_space<vmem>>, vector<1x4x256xf32>
    %1 = vector.shape_cast %0 : vector<1x4x256xf32> to vector<4x256xf32>
    %c0_2 = arith.constant 0 : index
    %2 = memref.load %arg2[%c0_2] : memref<1xf32, #tpu.memory_space<smem>>
    %c0_3 = arith.constant 0 : index
    %3 = memref.load %arg3[%c0_3] : memref<1xf32, #tpu.memory_space<smem>>
    %4 = vector.broadcast %2 : f32 to vector<4x256xf32>
    %c0_4 = arith.constant 0 : index
    %c0_5 = arith.constant 0 : index
    %c0_6 = arith.constant 0 : index
    %5 = vector.load %arg1[%c0_4, %c0_5, %c0_6] : memref<9x4x4xf32, #tpu.memory_space<vmem>>, vector<1x4x4xf32>
    %6 = vector.shape_cast %5 : vector<1x4x4xf32> to vector<4x4xf32>
    %cst = arith.constant dense<0.000000e+00> : vector<4x256xf32>
    %7 = tpu.matmul %6, %1, %cst {dimension_numbers = #tpu.dot_dimension_numbers<[1], [0], [0], [1], [0, 0, 1, 1], [], []>} : vector<4x4xf32>, vector<4x256xf32>, vector<4x256xf32> -> vector<4x256xf32>
    %8 = vector.extract_strided_slice %7 {offsets = [0, 239], sizes = [4, 17], strides = [1, 1]} : vector<4x256xf32> to vector<4x17xf32>
    %9 = vector.extract_strided_slice %7 {offsets = [0, 0], sizes = [4, 239], strides = [1, 1]} : vector<4x256xf32> to vector<4x239xf32>
    %10 = tpu.concatenate %8, %9 in 1 : vector<4x17xf32>, vector<4x239xf32> -> vector<4x256xf32>
    %c0_7 = arith.constant 0 : index
    %c0_8 = arith.constant 0 : index
    %c0_9 = arith.constant 0 : index
    %11 = vector.load %arg4[%c0_7, %c0_8, %c0_9] : memref<9x1x256xf32, #tpu.memory_space<vmem>>, vector<1x1x256xf32>
    %12 = vector.shape_cast %11 : vector<1x1x256xf32> to vector<1x256xf32>
    %13 = vector.broadcast %12 : vector<1x256xf32> to vector<4x256xf32>
    %14 = arith.mulf %10, %13 : vector<4x256xf32>
    %15 = arith.addf %4, %14 : vector<4x256xf32>
    %c1 = arith.constant 1 : index
    %c0_10 = arith.constant 0 : index
    %c0_11 = arith.constant 0 : index
    %16 = vector.load %arg1[%c1, %c0_10, %c0_11] : memref<9x4x4xf32, #tpu.memory_space<vmem>>, vector<1x4x4xf32>
    %17 = vector.shape_cast %16 : vector<1x4x4xf32> to vector<4x4xf32>
    %cst_12 = arith.constant dense<0.000000e+00> : vector<4x256xf32>
    %18 = tpu.matmul %17, %1, %cst_12 {dimension_numbers = #tpu.dot_dimension_numbers<[1], [0], [0], [1], [0, 0, 1, 1], [], []>} : vector<4x4xf32>, vector<4x256xf32>, vector<4x256xf32> -> vector<4x256xf32>
    %19 = vector.extract_strided_slice %18 {offsets = [0, 240], sizes = [4, 16], strides = [1, 1]} : vector<4x256xf32> to vector<4x16xf32>
    %20 = vector.extract_strided_slice %18 {offsets = [0, 0], sizes = [4, 240], strides = [1, 1]} : vector<4x256xf32> to vector<4x240xf32>
    %21 = tpu.concatenate %19, %20 in 1 : vector<4x16xf32>, vector<4x240xf32> -> vector<4x256xf32>
    %c1_13 = arith.constant 1 : index
    %c0_14 = arith.constant 0 : index
    %c0_15 = arith.constant 0 : index
    %22 = vector.load %arg4[%c1_13, %c0_14, %c0_15] : memref<9x1x256xf32, #tpu.memory_space<vmem>>, vector<1x1x256xf32>
    %23 = vector.shape_cast %22 : vector<1x1x256xf32> to vector<1x256xf32>
    %24 = vector.broadcast %23 : vector<1x256xf32> to vector<4x256xf32>
    %25 = arith.mulf %21, %24 : vector<4x256xf32>
    %26 = arith.addf %15, %25 : vector<4x256xf32>
    %c2 = arith.constant 2 : index
    %c0_16 = arith.constant 0 : index
    %c0_17 = arith.constant 0 : index
    %27 = vector.load %arg1[%c2, %c0_16, %c0_17] : memref<9x4x4xf32, #tpu.memory_space<vmem>>, vector<1x4x4xf32>
    %28 = vector.shape_cast %27 : vector<1x4x4xf32> to vector<4x4xf32>
    %cst_18 = arith.constant dense<0.000000e+00> : vector<4x256xf32>
    %29 = tpu.matmul %28, %1, %cst_18 {dimension_numbers = #tpu.dot_dimension_numbers<[1], [0], [0], [1], [0, 0, 1, 1], [], []>} : vector<4x4xf32>, vector<4x256xf32>, vector<4x256xf32> -> vector<4x256xf32>
    %30 = vector.extract_strided_slice %29 {offsets = [0, 241], sizes = [4, 15], strides = [1, 1]} : vector<4x256xf32> to vector<4x15xf32>
    %31 = vector.extract_strided_slice %29 {offsets = [0, 0], sizes = [4, 241], strides = [1, 1]} : vector<4x256xf32> to vector<4x241xf32>
    %32 = tpu.concatenate %30, %31 in 1 : vector<4x15xf32>, vector<4x241xf32> -> vector<4x256xf32>
    %c2_19 = arith.constant 2 : index
    %c0_20 = arith.constant 0 : index
    %c0_21 = arith.constant 0 : index
    %33 = vector.load %arg4[%c2_19, %c0_20, %c0_21] : memref<9x1x256xf32, #tpu.memory_space<vmem>>, vector<1x1x256xf32>
    %34 = vector.shape_cast %33 : vector<1x1x256xf32> to vector<1x256xf32>
    %35 = vector.broadcast %34 : vector<1x256xf32> to vector<4x256xf32>
    %36 = arith.mulf %32, %35 : vector<4x256xf32>
    %37 = arith.addf %26, %36 : vector<4x256xf32>
    %c3 = arith.constant 3 : index
    %c0_22 = arith.constant 0 : index
    %c0_23 = arith.constant 0 : index
    %38 = vector.load %arg1[%c3, %c0_22, %c0_23] : memref<9x4x4xf32, #tpu.memory_space<vmem>>, vector<1x4x4xf32>
    %39 = vector.shape_cast %38 : vector<1x4x4xf32> to vector<4x4xf32>
    %cst_24 = arith.constant dense<0.000000e+00> : vector<4x256xf32>
    %40 = tpu.matmul %39, %1, %cst_24 {dimension_numbers = #tpu.dot_dimension_numbers<[1], [0], [0], [1], [0, 0, 1, 1], [], []>} : vector<4x4xf32>, vector<4x256xf32>, vector<4x256xf32> -> vector<4x256xf32>
    %41 = vector.extract_strided_slice %40 {offsets = [0, 255], sizes = [4, 1], strides = [1, 1]} : vector<4x256xf32> to vector<4x1xf32>
    %42 = vector.extract_strided_slice %40 {offsets = [0, 0], sizes = [4, 255], strides = [1, 1]} : vector<4x256xf32> to vector<4x255xf32>
    %43 = tpu.concatenate %41, %42 in 1 : vector<4x1xf32>, vector<4x255xf32> -> vector<4x256xf32>
    %c3_25 = arith.constant 3 : index
    %c0_26 = arith.constant 0 : index
    %c0_27 = arith.constant 0 : index
    %44 = vector.load %arg4[%c3_25, %c0_26, %c0_27] : memref<9x1x256xf32, #tpu.memory_space<vmem>>, vector<1x1x256xf32>
    %45 = vector.shape_cast %44 : vector<1x1x256xf32> to vector<1x256xf32>
    %46 = vector.broadcast %45 : vector<1x256xf32> to vector<4x256xf32>
    %47 = arith.mulf %43, %46 : vector<4x256xf32>
    %48 = arith.addf %37, %47 : vector<4x256xf32>
    %c4 = arith.constant 4 : index
    %c0_28 = arith.constant 0 : index
    %c0_29 = arith.constant 0 : index
    %49 = vector.load %arg1[%c4, %c0_28, %c0_29] : memref<9x4x4xf32, #tpu.memory_space<vmem>>, vector<1x4x4xf32>
    %50 = vector.shape_cast %49 : vector<1x4x4xf32> to vector<4x4xf32>
    %cst_30 = arith.constant dense<0.000000e+00> : vector<4x256xf32>
    %51 = tpu.matmul %50, %1, %cst_30 {dimension_numbers = #tpu.dot_dimension_numbers<[1], [0], [0], [1], [0, 0, 1, 1], [], []>} : vector<4x4xf32>, vector<4x256xf32>, vector<4x256xf32> -> vector<4x256xf32>
    %52 = arith.addf %48, %51 : vector<4x256xf32>
    %c5 = arith.constant 5 : index
    %c0_31 = arith.constant 0 : index
    %c0_32 = arith.constant 0 : index
    %53 = vector.load %arg1[%c5, %c0_31, %c0_32] : memref<9x4x4xf32, #tpu.memory_space<vmem>>, vector<1x4x4xf32>
    %54 = vector.shape_cast %53 : vector<1x4x4xf32> to vector<4x4xf32>
    %cst_33 = arith.constant dense<0.000000e+00> : vector<4x256xf32>
    %55 = tpu.matmul %54, %1, %cst_33 {dimension_numbers = #tpu.dot_dimension_numbers<[1], [0], [0], [1], [0, 0, 1, 1], [], []>} : vector<4x4xf32>, vector<4x256xf32>, vector<4x256xf32> -> vector<4x256xf32>
    %56 = vector.extract_strided_slice %55 {offsets = [0, 1], sizes = [4, 255], strides = [1, 1]} : vector<4x256xf32> to vector<4x255xf32>
    %57 = vector.extract_strided_slice %55 {offsets = [0, 0], sizes = [4, 1], strides = [1, 1]} : vector<4x256xf32> to vector<4x1xf32>
    %58 = tpu.concatenate %56, %57 in 1 : vector<4x255xf32>, vector<4x1xf32> -> vector<4x256xf32>
    %c5_34 = arith.constant 5 : index
    %c0_35 = arith.constant 0 : index
    %c0_36 = arith.constant 0 : index
    %59 = vector.load %arg4[%c5_34, %c0_35, %c0_36] : memref<9x1x256xf32, #tpu.memory_space<vmem>>, vector<1x1x256xf32>
    %60 = vector.shape_cast %59 : vector<1x1x256xf32> to vector<1x256xf32>
    %61 = vector.broadcast %60 : vector<1x256xf32> to vector<4x256xf32>
    %62 = arith.mulf %58, %61 : vector<4x256xf32>
    %63 = arith.addf %52, %62 : vector<4x256xf32>
    %c6 = arith.constant 6 : index
    %c0_37 = arith.constant 0 : index
    %c0_38 = arith.constant 0 : index
    %64 = vector.load %arg1[%c6, %c0_37, %c0_38] : memref<9x4x4xf32, #tpu.memory_space<vmem>>, vector<1x4x4xf32>
    %65 = vector.shape_cast %64 : vector<1x4x4xf32> to vector<4x4xf32>
    %cst_39 = arith.constant dense<0.000000e+00> : vector<4x256xf32>
    %66 = tpu.matmul %65, %1, %cst_39 {dimension_numbers = #tpu.dot_dimension_numbers<[1], [0], [0], [1], [0, 0, 1, 1], [], []>} : vector<4x4xf32>, vector<4x256xf32>, vector<4x256xf32> -> vector<4x256xf32>
    %67 = vector.extract_strided_slice %66 {offsets = [0, 15], sizes = [4, 241], strides = [1, 1]} : vector<4x256xf32> to vector<4x241xf32>
    %68 = vector.extract_strided_slice %66 {offsets = [0, 0], sizes = [4, 15], strides = [1, 1]} : vector<4x256xf32> to vector<4x15xf32>
    %69 = tpu.concatenate %67, %68 in 1 : vector<4x241xf32>, vector<4x15xf32> -> vector<4x256xf32>
    %c6_40 = arith.constant 6 : index
    %c0_41 = arith.constant 0 : index
    %c0_42 = arith.constant 0 : index
    %70 = vector.load %arg4[%c6_40, %c0_41, %c0_42] : memref<9x1x256xf32, #tpu.memory_space<vmem>>, vector<1x1x256xf32>
    %71 = vector.shape_cast %70 : vector<1x1x256xf32> to vector<1x256xf32>
    %72 = vector.broadcast %71 : vector<1x256xf32> to vector<4x256xf32>
    %73 = arith.mulf %69, %72 : vector<4x256xf32>
    %74 = arith.addf %63, %73 : vector<4x256xf32>
    %c7 = arith.constant 7 : index
    %c0_43 = arith.constant 0 : index
    %c0_44 = arith.constant 0 : index
    %75 = vector.load %arg1[%c7, %c0_43, %c0_44] : memref<9x4x4xf32, #tpu.memory_space<vmem>>, vector<1x4x4xf32>
    %76 = vector.shape_cast %75 : vector<1x4x4xf32> to vector<4x4xf32>
    %cst_45 = arith.constant dense<0.000000e+00> : vector<4x256xf32>
    %77 = tpu.matmul %76, %1, %cst_45 {dimension_numbers = #tpu.dot_dimension_numbers<[1], [0], [0], [1], [0, 0, 1, 1], [], []>} : vector<4x4xf32>, vector<4x256xf32>, vector<4x256xf32> -> vector<4x256xf32>
    %78 = vector.extract_strided_slice %77 {offsets = [0, 16], sizes = [4, 240], strides = [1, 1]} : vector<4x256xf32> to vector<4x240xf32>
    %79 = vector.extract_strided_slice %77 {offsets = [0, 0], sizes = [4, 16], strides = [1, 1]} : vector<4x256xf32> to vector<4x16xf32>
    %80 = tpu.concatenate %78, %79 in 1 : vector<4x240xf32>, vector<4x16xf32> -> vector<4x256xf32>
    %c7_46 = arith.constant 7 : index
    %c0_47 = arith.constant 0 : index
    %c0_48 = arith.constant 0 : index
    %81 = vector.load %arg4[%c7_46, %c0_47, %c0_48] : memref<9x1x256xf32, #tpu.memory_space<vmem>>, vector<1x1x256xf32>
    %82 = vector.shape_cast %81 : vector<1x1x256xf32> to vector<1x256xf32>
    %83 = vector.broadcast %82 : vector<1x256xf32> to vector<4x256xf32>
    %84 = arith.mulf %80, %83 : vector<4x256xf32>
    %85 = arith.addf %74, %84 : vector<4x256xf32>
    %c8 = arith.constant 8 : index
    %c0_49 = arith.constant 0 : index
    %c0_50 = arith.constant 0 : index
    %86 = vector.load %arg1[%c8, %c0_49, %c0_50] : memref<9x4x4xf32, #tpu.memory_space<vmem>>, vector<1x4x4xf32>
    %87 = vector.shape_cast %86 : vector<1x4x4xf32> to vector<4x4xf32>
    %cst_51 = arith.constant dense<0.000000e+00> : vector<4x256xf32>
    %88 = tpu.matmul %87, %1, %cst_51 {dimension_numbers = #tpu.dot_dimension_numbers<[1], [0], [0], [1], [0, 0, 1, 1], [], []>} : vector<4x4xf32>, vector<4x256xf32>, vector<4x256xf32> -> vector<4x256xf32>
    %89 = vector.extract_strided_slice %88 {offsets = [0, 17], sizes = [4, 239], strides = [1, 1]} : vector<4x256xf32> to vector<4x239xf32>
    %90 = vector.extract_strided_slice %88 {offsets = [0, 0], sizes = [4, 17], strides = [1, 1]} : vector<4x256xf32> to vector<4x17xf32>
    %91 = tpu.concatenate %89, %90 in 1 : vector<4x239xf32>, vector<4x17xf32> -> vector<4x256xf32>
    %c8_52 = arith.constant 8 : index
    %c0_53 = arith.constant 0 : index
    %c0_54 = arith.constant 0 : index
    %92 = vector.load %arg4[%c8_52, %c0_53, %c0_54] : memref<9x1x256xf32, #tpu.memory_space<vmem>>, vector<1x1x256xf32>
    %93 = vector.shape_cast %92 : vector<1x1x256xf32> to vector<1x256xf32>
    %94 = vector.broadcast %93 : vector<1x256xf32> to vector<4x256xf32>
    %95 = arith.mulf %91, %94 : vector<4x256xf32>
    %96 = arith.addf %85, %95 : vector<4x256xf32>
    %cst_55 = arith.constant 0.000000e+00 : f32
    %97 = vector.broadcast %cst_55 : f32 to vector<4x256xf32>
    %98 = arith.subf %97, %96 : vector<4x256xf32>
    %99 = math.exp %98 : vector<4x256xf32>
    %cst_56 = arith.constant 1.000000e+00 : f32
    %100 = vector.broadcast %cst_56 : f32 to vector<4x256xf32>
    %101 = arith.addf %100, %99 : vector<4x256xf32>
    %cst_57 = arith.constant 1.000000e+00 : f32
    %102 = vector.broadcast %cst_57 : f32 to vector<4x256xf32>
    %103 = arith.divf %102, %101 : vector<4x256xf32>
    %104 = vector.broadcast %3 : f32 to vector<4x256xf32>
    %105 = arith.mulf %104, %103 : vector<4x256xf32>
    %cst_58 = arith.constant 1.000000e+00 : f32
    %106 = vector.broadcast %cst_58 : f32 to vector<4x256xf32>
    %107 = arith.addf %105, %106 : vector<4x256xf32>
    %108 = arith.mulf %1, %107 : vector<4x256xf32>
    %c0_59 = arith.constant 0 : index
    %c0_60 = arith.constant 0 : index
    %c0_61 = arith.constant 0 : index
    %109 = vector.load %arg6[%c0_59, %c0_60, %c0_61] : memref<1x4x256xf32, #tpu.memory_space<vmem>>, vector<1x4x256xf32>
    %110 = vector.shape_cast %109 : vector<1x4x256xf32> to vector<4x256xf32>
    %111 = vector.shape_cast %108 : vector<4x256xf32> to vector<1x4x256xf32>
    tpu.vector_store %arg6[%c0_59, %c0_60, %c0_61], %111 {strides = array<i32>} : memref<1x4x256xf32, #tpu.memory_space<vmem>>, vector<1x4x256xf32>,
    return
  }
  func.func @transform_0(%arg0: i32) -> (i32, i32, i32) {
    %c0_i32 = arith.constant 0 : i32
    %c0_i32_0 = arith.constant 0 : i32
    %c0_i32_1 = arith.constant 0 : i32
    %c0_i32_2 = arith.constant 0 : i32
    return %c0_i32, %c0_i32_0, %c0_i32_1 : i32, i32, i32
  }
  func.func @transform_1(%arg0: i32) -> i32 {
    %c0_i32 = arith.constant 0 : i32
    %c0_i32_0 = arith.constant 0 : i32
    return %c0_i32 : i32
  }
  func.func @transform_2(%arg0: i32) -> i32 {
    %c0_i32 = arith.constant 0 : i32
    %c0_i32_0 = arith.constant 0 : i32
    return %c0_i32 : i32
  }
  func.func @transform_3(%arg0: i32) -> (i32, i32, i32) {
    %c0_i32 = arith.constant 0 : i32
    %c0_i32_0 = arith.constant 0 : i32
    %c0_i32_1 = arith.constant 0 : i32
    %c0_i32_2 = arith.constant 0 : i32
    return %c0_i32, %c0_i32_0, %c0_i32_1 : i32, i32, i32
  }
  func.func @transform_4(%arg0: i32) -> (i32, i32, i32) {
    %c0_i32 = arith.constant 0 : i32
    %c0_i32_0 = arith.constant 0 : i32
    %c0_i32_1 = arith.constant 0 : i32
    return %arg0, %c0_i32, %c0_i32_0 : i32, i32, i32
  }
  func.func @transform_5(%arg0: i32) -> (i32, i32, i32) {
    %c0_i32 = arith.constant 0 : i32
    %c0_i32_0 = arith.constant 0 : i32
    %c0_i32_1 = arith.constant 0 : i32
    return %arg0, %c0_i32, %c0_i32_0 : i32, i32, i32
  }
}

</mosaic_0001>

<bundles_post_ra>
// kernel: tpu_custom_call.1
= control target key start
LH: loop header
LB: loop body
LE: loop exit
PB: predicated region body
PF: predicated region fallthrough
CT: control target
= control target key end

     0   :  { %s1693_s0 = inlined_call_operand.vmem [shape: f32[9,4,4], index: 0, kind: input, shape index: {}]   ;;  %s1694_s1 = inlined_call_operand.<no memory space> [shape: f32[1], index: 1, kind: input, shape index: {}]   ;;  %s1695_s2 = inlined_call_operand.<no memory space> [shape: f32[1], index: 2, kind: input, shape index: {}]   ;;  %s1696_s3 = inlined_call_operand.vmem [shape: f32[9,1,256], index: 3, kind: input, shape index: {}]   ;;  %s1697_s4 = inlined_call_operand.vmem [shape: f32[2,4,256], index: 4, kind: input, shape index: {}]   ;;  %s1698_s5 = inlined_call_operand.hbm [shape: f32[2,4,256], index: 5, kind: output, shape index: {}]  }
   0x1   :  { %10 = sst [smem:[#allocation2]] %s1694_s1 }
   0x2   :  { %11 = sst [smem:[#allocation3]] %s1695_s2 }
   0x3   :  { %12 = vsyncpa [#allocation5], 0 }
   0x4   :  { %14 = vsyncpa [#allocation5 + $0x1], 0  ;;  %s1473_s22 = smov 0   ;;  %s1475_s23 = smov 0  }
   0x5   :  { %s1477_s24 = smov 0   ;;  %s1479_s25 = smov 0  }
   0x6 LB: > { %s1494_s1 = sadd.s32 4294967295, %s1425_s25   ;;  %s1250_s2 = sadd.s32 4294967294, %s1425_s25   ;;  %s1425_s25 = sphi %s1479_s25, %s1704_s25   ;;  %s1421_s24 = sphi %s1477_s24, %s1703_s24   ;;  %s1417_s23 = sphi %s1475_s23, %s1702_s23   ;;  %s1413_s22 = sphi %s1473_s22, %s1701_s22  }
   0x7   : > { %s1498_s26 = sadd.s32 1, %s1425_s25   ;;  %s137_s27 = sadd.s32 1, %s1421_s24 }
   0x8   : > { %s134_s28 = ssub.s32 %s1425_s25, %s1498_s26  ;;  %p147_p0 = scmp.ne.s32.totalorder %s1421_s24, %s1417_s23 }
   0x9   : > { %p135_p1 = scmp.eq.s32.totalorder %s134_s28, 0  ;;  %p148_p2 = scmp.eq.s32.totalorder %s1494_s1, 1 }
   0xa   : > { %p153_p3 = scmp.ne.s32.totalorder %s1417_s23, %s1413_s22  ;;  %p154_p4 = scmp.eq.s32.totalorder %s1250_s2, 1 }
   0xb   : > { %s1509_s29 = scalar_select %p135_p1, %s1421_s24, %s137_s27  }
   0xc   : > { %p1511_p5 = por %p148_p2, %p147_p0  ;;  %p1515_p6 = por %p154_p4, %p153_p3 }
   0xd   : > { %p1253_p7 = scmp.ge.s32.totalorder %s1425_s25, 1  ;;  %p192_p8 = scmp.lt.s32.totalorder %s1425_s25, 3 }
   0xf   : > { %p193_p9 = pnand %p1253_p7, %p192_p8 }
  0x10   : > { %p220_p10 = scmp.lt.s32.totalorder (!%p193_p9), %s1494_s1, 1  ;;  %v1427_v0 = vmov (!%p193_p9), 0.0   ;;  %vm236_vm0 = vcmask (!%p193_p9), 1043456   ;;  %v229_v3 = vld [vmem:[%s1693_s0] sm:$0xf] (!%p193_p9)  ;;  %vm232_vm1 = vcmask (!%p193_p9), 31744   ;;  %v326_v30 = vlaneseq (!%p193_p9) }
  0x11   : > { %196 = sbr.rel (%p193_p9) target bundleno = 444 (0x1bc), region = 40  ;;  %305 = vmatprep.mubr.f32.mxu0 (!%p193_p9), %v1427_v0  ;;  %409 = vmatprep.mubr.f32.mxu1 (!%p193_p9), %v1427_v0  ;;  %v1260_v4 = vld [vmem:[%s1693_s0 + $0x4] sm:$0xf] (!%p193_p9)  ;;  %v1265_v5 = vld [vmem:[%s1693_s0 + $0x8] sm:$0xf] (!%p193_p9)  ;;  %s1428_s12 = smov (!%p193_p9), 16  }
  0x12   : > { %v1270_v6 = vld [vmem:[%s1693_s0 + $0xc] sm:$0xf] (!%p193_p9)  ;;  %v1275_v7 = vld [vmem:[%s1693_s0 + $0x10] sm:$0xf] (!%p193_p9)  ;;  %v1279_v8 = vld [vmem:[%s1693_s0 + $0x14] sm:$0xf] (!%p193_p9) }
  0x13   : > { %v1284_v9 = vld [vmem:[%s1693_s0 + $0x18] sm:$0xf] (!%p193_p9)  ;;  %v1289_v10 = vld [vmem:[%s1693_s0 + $0x1c] sm:$0xf] (!%p193_p9)  ;;  %v1294_v11 = vld [vmem:[%s1693_s0 + $0x20] sm:$0xf] (!%p193_p9) }
  0x14   : > { %s1429_s13 = smov (!%p193_p9), 17   ;;  %s1430_s14 = smov (!%p193_p9), 15   ;;  %v327_v31 = vshrl.u32 (!%p193_p9), %v326_v30, 7  ;;  %v324_v34 = vld [vmem:[%s1696_s3] sm:$0x3] (!%p193_p9)  ;;  %vm319_vm2 = vcmask (!%p193_p9), 138240  }
  0x15   : > { %s1431_s15 = smov (!%p193_p9), 1   ;;  %s1432_s16 = smov (!%p193_p9), 127   ;;  %v1264_v37 = vld [vmem:[%s1696_s3 + $0x2] sm:$0x3] (!%p193_p9)  ;;  %vm423_vm3 = vcmask (!%p193_p9), 130048   ;;  %vm528_vm4 = vcmask (!%p193_p9), 121856  }
  0x16   : > { %s1433_s17 = smov (!%p193_p9), 113   ;;  %s1434_s18 = smov (!%p193_p9), 112   ;;  %v1597_v32 = vsub.s32 (!%p193_p9), 0, %v327_v31  ;;  %v1599_v33 = vsub.s32 (!%p193_p9), 1, %v327_v31  ;;  %v1269_v46 = vld [vmem:[%s1696_s3 + $0x4] sm:$0x3] (!%p193_p9) }
  0x17   : > { %s1435_s19 = smov (!%p193_p9), 111   ;;  %s226_s20 = sld [smem:[#allocation2]] (!%p193_p9)  ;;  %v1274_v52 = vld [vmem:[%s1696_s3 + $0x6] sm:$0x3] (!%p193_p9)  ;;  %vm633_vm5 = vcmask (!%p193_p9), 7168   ;;  %vm815_vm6 = vcmask (!%p193_p9), 1039360  }
  0x18   : > { %s221_s7 = scalar_select %p220_p10, %s1494_s1, 1  ;;  %v329_v38 = vrot.slane %v324_v34, %v1597_v32  ;;  %v333_v39 = vrot.slane %v324_v34, %v1599_v33  ;;  %v434_v42 = vrot.slane %v1264_v37, %v1597_v32  ;;  %v438_v47 = vrot.slane %v1264_v37, %v1599_v33 }
  0x19   : > { %v539_v56 = vrot.slane %v1269_v46, %v1597_v32  ;;  %v543_v57 = vrot.slane %v1269_v46, %v1599_v33  ;;  %v644_v63 = vrot.slane %v1274_v52, %v1597_v32  ;;  %vm920_vm7 = vcmask 924672   ;;  %s1305_s2 = sshll.u32 %s1494_s1, 7  ;;  %s1436_s1 = smov [#allocation4]  }
  0x1a   : > { %s1304_s8 = sshll.u32 %s221_s7, 3  ;;  %vm1025_vm8 = vcmask 916480   ;;  %vm1130_vm9 = vcmask 908288   ;;  %s1651_s9 = scalar_lea.hbm %s1698_s5, %s1305_s2 }
  0x1b   : > { %s224_s11 = scalar_lea.vmem %s1697_s4, %s1304_s8 }
  0x1c   : > { %v1526_v1 = vld [vmem:[%s224_s11] sm:$0xff] }
  0x1d   : > { %v231_v2 = vcombine.high %v1526_v1, %v1526_v1  ;;  %v228_v43 = vstv %s226_s20  ;;  %s217_s20 = sand.u32 1, %s1417_s23  }
  0x1e   : > { %s1254_s21 = sshll.u32 %s217_s20, 3  ;;  %s1177_s10 = scalar_lea.sflag [#allocation5], %s217_s20 }
  0x1f   : > { %1257 = vmatprep.subr.msk.mxu0 %vm236_vm0, %v231_v2  ;;  %1261 = vmatprep.subr.msk.mxu1 %vm236_vm0, %v231_v2  ;;  %s219_s27 = scalar_lea.vmem [#allocation4], %s1254_s21 }
  0x20   : > { %1258 = vmatpush1.msk.msra.mxu0 %vm236_vm0, %v1526_v1  ;;  %1262 = vmatpush1.msk.msra.mxu1 %vm236_vm0, %v1526_v1  ;;  %s1191_s28 = sshll.u32 %s219_s27, 4  ;;  %s1653_s28 = int_to_ptr.vmem [resolvable:$true] %s1191_s28 }
  0x21   : > { %1259 = vmatmul.mubr.msk.f32.vlgmr.msra.gmra.mrb[0].mxu0 %vm232_vm1, %v229_v3  ;;  %1263 = vmatmul.mubr.msk.f32.vlgmr.msra.gmra.mrb[0].mxu1 %vm232_vm1, %v1260_v4  ;;  %s1363_s11 = scalar_lea.vmem %s1653_s28, 128 }
  0x22   : > { %1266 = vmatprep.subr.msk.mxu0 %vm236_vm0, %v231_v2  ;;  %514 = vmatprep.mubr.f32.mxu0 %v1427_v0  ;;  %p1364_p11 = scmp.ne.s32.totalorder %s1653_s28, %s1363_s11 }
  0x23   : > { %1267 = vmatpush1.msk.msra.mxu0 %vm236_vm0, %v1526_v1  ;;  %1271 = vmatprep.subr.msk.mxu1 %vm236_vm0, %v231_v2 }
  0x24   : > { %1272 = vmatpush1.msk.msra.mxu1 %vm236_vm0, %v1526_v1  ;;  %619 = vmatprep.mubr.f32.mxu1 %v1427_v0  ;;  %p1365_p12 = pnand %p1364_p11, %p1511_p5 }
  0x25   : > { %1268 = vmatmul.mubr.msk.f32.vlgmr.msra.gmra.mrb[2].mxu0 %vm232_vm1, %v1265_v5  ;;  %1273 = vmatmul.mubr.msk.f32.vlgmr.msra.gmra.mrb[2].mxu1 %vm232_vm1, %v1270_v6 }
  0x26   : > { %1276 = vmatprep.subr.msk.mxu0 %vm236_vm0, %v231_v2  ;;  %1280 = vmatprep.subr.msk.mxu1 %vm236_vm0, %v231_v2  ;;  %p1366_p13 = pneg %p1365_p12 }
  0x27   : > { %1277 = vmatpush1.msk.msra.mxu0 %vm236_vm0, %v1526_v1  ;;  %1281 = vmatpush1.msk.msra.mxu1 %vm236_vm0, %v1526_v1 }
  0x28   : > { %724 = vmatprep.mubr.f32.mxu0 %v1427_v0  ;;  %802 = vmatprep.mubr.f32.mxu1 %v1427_v0 }
  0x29   : > { %1278 = vmatmul.mubr.msk.f32.vlgmr.msra.gmra.mrb[4].mxu0 %vm232_vm1, %v1275_v7  ;;  %1282 = vmatmul.mubr.msk.f32.vlgmr.msra.gmra.mrb[4].mxu1 %vm232_vm1, %v1279_v8 }
  0x2a   : > { %1285 = vmatprep.subr.msk.mxu0 %vm236_vm0, %v231_v2  ;;  %907 = vmatprep.mubr.f32.mxu0 %v1427_v0 }
  0x2b   : > { %1286 = vmatpush1.msk.msra.mxu0 %vm236_vm0, %v1526_v1  ;;  %1290 = vmatprep.subr.msk.mxu1 %vm236_vm0, %v231_v2 }
  0x2c   : > { %1291 = vmatpush1.msk.msra.mxu1 %vm236_vm0, %v1526_v1  ;;  %1012 = vmatprep.mubr.f32.mxu1 %v1427_v0 }
  0x2d   : > { %1287 = vmatmul.mubr.msk.f32.vlgmr.msra.gmra.mrb[6].mxu0 %vm232_vm1, %v1284_v9  ;;  %1292 = vmatmul.mubr.msk.f32.vlgmr.msra.gmra.mrb[6].mxu1 %vm232_vm1, %v1289_v10 }
  0x2e   : > { %1295 = vmatprep.subr.msk.mxu0 %vm236_vm0, %v231_v2  ;;  %1117 = vmatprep.mubr.f32.mxu0 %v1427_v0  ;;  %v648_v0 = vrot.slane %v1274_v52, %v1599_v33 }
  0x2f   : > { %1296 = vmatpush1.msk.msra.mxu0 %vm236_vm0, %v1526_v1 }
  0x31   : > { %1297 = vmatmul.mubr.msk.f32.vlgmr.msra.gmra.mrb[8].mxu0 %vm232_vm1, %v1294_v11 }
  0xf4   : > { %v307_v12 = vpop.f32.mrb[0].mxu0  ;;  %v411_v13 = vpop.f32.mrb[0].mxu1 }
  0xf5   : > { %421 = vrot.lane.b32.xlu1 %v411_v13, %s1428_s12  ;;  %v413_v14 = vpop.f32.mrb[1].mxu1  ;;  %317 = vrot.lane.b32.xlu0 %v307_v12, %s1429_s13  ;;  %v309_v15 = vpop.f32.mrb[1].mxu0  ;;  %v1283_v12 = vld [vmem:[%s1696_s3 + $0xa] sm:$0x3] }
  0xf8   : > { %v516_v16 = vpop.f32.mrb[2].mxu0  ;;  %v621_v17 = vpop.f32.mrb[2].mxu1 }
  0xf9   : > { %417 = vrot.lane.b32.xlu1 %v413_v14, %s1428_s12  ;;  %313 = vrot.lane.b32.xlu0 %v309_v15, %s1429_s13  ;;  %v518_v18 = vpop.f32.mrb[3].mxu0  ;;  %v623_v19 = vpop.f32.mrb[3].mxu1  ;;  %s1367_s12 = sshll.u32 %s1436_s1, 4  ;;  %s1368_s12 = int_to_ptr.vmem [resolvable:$false] %s1367_s12 }
  0xfa   : > { %s1369_s13 = scalar_lea.vmem %s1368_s12, 256  ;;  %p1370_p0 = scmp.lt.s32.totalorder %s1653_s28, %s1368_s12 }
  0xfb   : > { %p1371_p1 = scmp.lt.s32.totalorder %s1369_s13, %s1363_s11 }
  0xfc   : > { %v1593_v20 = vpop.f32.mrb[4].mxu0  ;;  %v804_v21 = vpop.f32.mrb[4].mxu1 }
  0xfd   : > { %526 = vrot.lane.b32.xlu1 %v516_v16, %s1430_s14  ;;  %522 = vrot.lane.b32.xlu0 %v518_v18, %s1430_s14  ;;  %v1595_v22 = vpop.f32.mrb[5].mxu0  ;;  %v806_v23 = vpop.f32.mrb[5].mxu1  ;;  %v1288_v18 = vld [vmem:[%s1696_s3 + $0xc] sm:$0x3]  ;;  %p1372_p2 = por %p1371_p1, %p1370_p0 }
  0xff   : > { %p1373_p3 = pnand %p1372_p2, %p1366_p13 }
 0x100   : > { %v909_v24 = vpop.f32.mrb[6].mxu0  ;;  %v1014_v25 = vpop.f32.mrb[6].mxu1 }
 0x101   : > { %631 = vrot.lane.b32.xlu1 %v621_v17, %s1431_s15  ;;  %627 = vrot.lane.b32.xlu0 %v623_v19, %s1431_s15  ;;  %v911_v26 = vpop.f32.mrb[7].mxu0  ;;  %v1016_v27 = vpop.f32.mrb[7].mxu1  ;;  %v827_v17 = vrot.slane %v1283_v12, %v1597_v32 }
 0x104   : > { %v1119_v28 = vpop.f32.mrb[8].mxu0 }
 0x105   : > { %813 = vrot.lane.b32.xlu1 %v806_v23, %s1432_s16  ;;  %811 = vrot.lane.b32.xlu0 %v804_v21, %s1432_s16  ;;  %v1121_v29 = vpop.f32.mrb[9].mxu0  ;;  %v831_v23 = vrot.slane %v1283_v12, %v1599_v33 }
 0x109   : > { %916 = vrot.lane.b32.xlu0 %v909_v24, %s1433_s17  ;;  %918 = vrot.lane.b32.xlu1 %v911_v26, %s1433_s17  ;;  %v1293_v24 = vld [vmem:[%s1696_s3 + $0xe] sm:$0x3] }
 0x10d   : > { %1021 = vrot.lane.b32.xlu0 %v1014_v25, %s1434_s18  ;;  %1023 = vrot.lane.b32.xlu1 %v1016_v27, %s1434_s18 }
 0x111   : > { %1126 = vrot.lane.b32.xlu0 %v1119_v28, %s1435_s19  ;;  %1128 = vrot.lane.b32.xlu1 %v1121_v29, %s1435_s19  ;;  %v932_v28 = vrot.slane %v1288_v18, %v1597_v32  ;;  %v936_v29 = vrot.slane %v1288_v18, %v1599_v33  ;;  %s227_s19 = sld [smem:[#allocation3]] }
 0x167   : > { %v422_v35 = vpop.permute.xlu1 %421  ;;  %v318_v36 = vpop.permute.xlu0 %317 }
 0x16b   : > { %v418_v40 = vpop.permute.xlu1 %417  ;;  %v314_v41 = vpop.permute.xlu0 %313 }
 0x16c   : > { %v320_v44 = vsel %vm319_vm2, %v318_v36, %v314_v41  ;;  %v323_v45 = vsel %vm319_vm2, %v314_v41, %v318_v36  ;;  %v424_v50 = vsel %vm423_vm3, %v422_v35, %v418_v40  ;;  %v427_v51 = vsel %vm423_vm3, %v418_v40, %v422_v35  ;;  %v1298_v41 = vld [vmem:[%s1696_s3 + $0x10] sm:$0x3] }
 0x16d   : > { %v336_v48 = vmul.f32 %v329_v38, %v323_v45  ;;  %v337_v49 = vmul.f32 %v333_v39, %v320_v44  ;;  %v441_v61 = vmul.f32 %v434_v42, %v427_v51  ;;  %v442_v62 = vmul.f32 %v438_v47, %v424_v50 }
 0x16e   : > { %v1037_v35 = vrot.slane %v1293_v24, %v1597_v32  ;;  %v1041_v36 = vrot.slane %v1293_v24, %v1599_v33 }
 0x16f   : > { %v338_v53 = vadd.f32 %v336_v48, %v228_v43  ;;  %v339_v54 = vadd.f32 %v337_v49, %v228_v43  ;;  %v527_v55 = vpop.permute.xlu1 %526  ;;  %v523_v58 = vpop.permute.xlu0 %522  ;;  %v1142_v48 = vrot.slane %v1298_v41, %v1597_v32 }
 0x170   : > { %v529_v59 = vsel %vm528_vm4, %v527_v55, %v523_v58  ;;  %v532_v60 = vsel %vm528_vm4, %v523_v58, %v527_v55 }
 0x171   : > { %v443_v2 = vadd.f32 %v441_v61, %v338_v53  ;;  %v444_v3 = vadd.f32 %v442_v62, %v339_v54  ;;  %v546_v4 = vmul.f32 %v539_v56, %v532_v60  ;;  %v547_v5 = vmul.f32 %v543_v57, %v529_v59 }
 0x173   : > { %v632_v6 = vpop.permute.xlu1 %631  ;;  %v628_v7 = vpop.permute.xlu0 %627  ;;  %v548_v13 = vadd.f32 %v546_v4, %v443_v2  ;;  %v549_v14 = vadd.f32 %v547_v5, %v444_v3 }
 0x174   : > { %v634_v8 = vsel %vm633_vm5, %v632_v6, %v628_v7  ;;  %v637_v9 = vsel %vm633_vm5, %v628_v7, %v632_v6  ;;  %v1165_v7 = vstv %s227_s19 }
 0x175   : > { %v651_v10 = vmul.f32 %v644_v63, %v637_v9  ;;  %v652_v11 = vmul.f32 %v648_v0, %v634_v8 }
 0x177   : > { %v814_v15 = vpop.permute.xlu1 %813  ;;  %v812_v16 = vpop.permute.xlu0 %811  ;;  %v653_v19 = vadd.f32 %v651_v10, %v548_v13  ;;  %v654_v21 = vadd.f32 %v652_v11, %v549_v14 }
 0x178   : > { %v816_v25 = vsel %vm815_vm6, %v812_v16, %v814_v15  ;;  %v820_v26 = vsel %vm815_vm6, %v814_v15, %v812_v16 }
 0x179   : > { %v731_v37 = vadd.f32 %v1593_v20, %v653_v19  ;;  %v732_v38 = vadd.f32 %v1595_v22, %v654_v21  ;;  %v834_v39 = vmul.f32 %v827_v17, %v816_v25  ;;  %v835_v40 = vmul.f32 %v831_v23, %v820_v26 }
 0x17a   : > { %v1146_v20 = vrot.slane %v1298_v41, %v1599_v33 }
 0x17b   : > { %v917_v27 = vpop.permute.xlu0 %916  ;;  %v919_v30 = vpop.permute.xlu1 %918  ;;  %v836_v22 = vadd.f32 %v834_v39, %v731_v37  ;;  %v837_v49 = vadd.f32 %v835_v40, %v732_v38 }
 0x17c   : > { %v921_v31 = vsel %vm920_vm7, %v917_v27, %v919_v30  ;;  %v925_v34 = vsel %vm920_vm7, %v919_v30, %v917_v27 }
 0x17d   : > { %v939_v42 = vmul.f32 %v932_v28, %v921_v31  ;;  %v940_v43 = vmul.f32 %v936_v29, %v925_v34 }
 0x17f   : > { %v1022_v44 = vpop.permute.xlu0 %1021  ;;  %v1024_v45 = vpop.permute.xlu1 %1023  ;;  %v941_v52 = vadd.f32 %v939_v42, %v836_v22  ;;  %v942_v53 = vadd.f32 %v940_v43, %v837_v49 }
 0x180   : > { %v1026_v46 = vsel %vm1025_vm8, %v1022_v44, %v1024_v45  ;;  %v1030_v47 = vsel %vm1025_vm8, %v1024_v45, %v1022_v44 }
 0x181   : > { %v1044_v50 = vmul.f32 %v1037_v35, %v1026_v46  ;;  %v1045_v51 = vmul.f32 %v1041_v36, %v1030_v47 }
 0x183   : > { %v1127_v54 = vpop.permute.xlu0 %1126  ;;  %v1129_v55 = vpop.permute.xlu1 %1128  ;;  %v1046_v58 = vadd.f32 %v1044_v50, %v941_v52  ;;  %v1047_v59 = vadd.f32 %v1045_v51, %v942_v53 }
 0x184   : > { %v1131_v56 = vsel %vm1130_vm9, %v1127_v54, %v1129_v55  ;;  %v1135_v57 = vsel %vm1130_vm9, %v1129_v55, %v1127_v54 }
 0x185   : > { %v1149_v60 = vmul.f32 %v1142_v48, %v1131_v56  ;;  %v1150_v61 = vmul.f32 %v1146_v20, %v1135_v57 }
 0x187   : > { %v1151_v62 = vadd.f32 %v1149_v60, %v1046_v58  ;;  %v1152_v63 = vadd.f32 %v1150_v61, %v1047_v59 }
 0x189   : > { %v1153_v32 = vsub.f32 0.0, %v1151_v62  ;;  %v1154_v0 = vsub.f32 0.0, %v1152_v63 }
 0x18b   : > { %v1155_v33 = vmul.f32 1.442695, %v1153_v32  ;;  %v1157_v2 = vmul.f32 1.442695, %v1154_v0 }
 0x18d   : > { %1355 = vpow2.f32 %v1155_v33 }
 0x18e   : > { %1357 = vpow2.f32 %v1157_v2 }
 0x197   : > { %v1356_v3 = vpop.eup %1355 }
 0x198   : > { %v1358_v4 = vpop.eup %1357  ;;  %v1159_v5 = vadd.f32 1.0, %v1356_v3 }
 0x199   : > { %v1160_v6 = vadd.f32 1.0, %v1358_v4 }
 0x19a   : > { %1359 = vrcp.f32 %v1159_v5 }
 0x19b   : > { %1361 = vrcp.f32 %v1160_v6 }
 0x1a4   : > { %v1360_v8 = vpop.eup %1359 }
 0x1a5   : > { %v1362_v9 = vpop.eup %1361  ;;  %v1166_v10 = vmul.f32 %v1360_v8, %v1165_v7 }
 0x1a6   : > { %v1167_v11 = vmul.f32 %v1362_v9, %v1165_v7 }
 0x1a7   : > { %v1168_v12 = vadd.f32 1.0, %v1166_v10 }
 0x1a8   : > { %v1169_v13 = vadd.f32 1.0, %v1167_v11 }
 0x1aa   : > { %v1172_v14 = vcombine.low %v1168_v12, %v1169_v13 }
 0x1ac   : > { %v1174_v15 = vmul.f32 %v1172_v14, %v1526_v1 }
 0x1ae   : > { %1175 = vst [vmem:[%s219_s27] sm:$0xff] %v1174_v15 }
 0x1af   : > { %1376 = shalt.err (!%p1373_p3)
}
 0x1b0   : > { %s1377_s14 = scalar_lea.hbm %s1651_s9, 128  ;;  %s1381_s17 = scalar_lea.hbm %s1698_s5, 256 }
 0x1b1   : > { %p1378_p4 = scmp.ne.s32.totalorder %s1651_s9, %s1377_s14  ;;  %p1382_p9 = scmp.lt.u32.totalorder %s1651_s9, %s1698_s5 }
 0x1b2   : > { %p1383_p10 = scmp.lt.u32.totalorder %s1381_s17, %s1377_s14  ;;  %p1385_p12 = scmp.lt.u32.totalorder %s1377_s14, %s1651_s9 }
 0x1b3   : > { %p1379_p7 = pnand %p1378_p4, %p1511_p5 }
 0x1b4   : > { %p1384_p11 = por %p1383_p10, %p1382_p9 }
 0x1b5   : > { %p1380_p8 = pneg %p1379_p7 }
 0x1b6   : > { %p1386_p13 = por %p1385_p12, %p1384_p11 }
 0x1b8   : > { %p1387_p0 = pnand %p1386_p13, %p1380_p8 }
 0x1ba   : > { %1390 = shalt.err (!%p1387_p0)
}
 0x1bb   : > { %1306 = dma.vmem_to_hbm [thread:$0]  (%p1511_p5), %s1653_s28, 128, %s1651_s9, %s1177_s10  }
 0x1bc PF: > { %p1312_p1 = scmp.ge.s32.totalorder %s1425_s25, 2  ;;  %s1203_s20 = sand.u32 1, %s1413_s22  }
 0x1bd   : > { %s1204_s21 = scalar_lea.sflag [#allocation5], %s1203_s20 }
 0x1be   : > { %p1309_p2 = pnand %p1312_p1, %p1515_p6 }
 0x1c0   : > { %1408 = dma.done.wait (!%p1309_p2), %s1204_s21, 128  }
 0x1c1   : > { %1410 = vsyncadd (!%p1309_p2), %s1204_s21, 4294967168  ;;  %p17_p3 = scmp.ge.s32.totalorder %s1498_s26, 4   ;;  %s1701_s22 = smov %s1417_s23 }
 0x1c2   : > { %s1702_s23 = smov %s1421_s24  ;;  %s1703_s24 = smov %s1509_s29 }
 0x1c3   : > { %s1704_s25 = smov %s1498_s26  ;;  %19 = sbr.rel (!%p17_p3) target bundleno = 6 (0x6), region = 90 }
 0x1ca   :  { %1209 = vsyncpa [#allocation5], 1 }
 0x1cb   :  { %1211 = vsyncpa [#allocation5 + $0x1], 1 }

</bundles_post_ra>
